<compile_context>
chip_gen: v7x
topology: tpu7x:2x2x1
jax: 0.10.0
libtpu: 0.0.40
codegen_flags: <defaults>
</compile_context>

<pallas_src>
import functools

import jax
import jax.numpy as jnp
from jax.experimental import pallas as pl
from jax.experimental.pallas import tpu as pltpu

H0, H1, H2 = 100, 50, 10     # fc0/fc1/fc2 output widths (from the nn.Module)
LANE = 128                   # TPU lane width; hidden/output dims padded to this


def _nnet_kernel(x_ref, w0_ref, w1_ref, w2_ref, b_ref, o_ref):
    """One batch tile: 3x (bf16 matmul + f32 bias + relu) + masked log_softmax."""
    # Ingest f32 straight from HBM; the on-chip VPU cast hides under the DMA.
    x = x_ref[...].astype(jnp.bfloat16)                    # (TB, image_size)
    b = b_ref[...]                                         # (3, LANE) f32

    h0 = jnp.dot(x, w0_ref[...], preferred_element_type=jnp.float32) + b[0:1, :]
    h0 = jnp.maximum(h0, 0.0)

    h1 = jnp.dot(h0.astype(jnp.bfloat16), w1_ref[...],
                 preferred_element_type=jnp.float32) + b[1:2, :]
    h1 = jnp.maximum(h1, 0.0)

    h2 = jnp.dot(h1.astype(jnp.bfloat16), w2_ref[...],
                 preferred_element_type=jnp.float32) + b[2:3, :]
    h2 = jnp.maximum(h2, 0.0)

    # log_softmax over the first H2 (=10) lanes only; the rest is zero padding.
    lane = jax.lax.broadcasted_iota(jnp.int32, h2.shape, dimension=1)
    z = jnp.where(lane < H2, h2, -jnp.inf)
    m = jnp.max(z, axis=-1, keepdims=True)
    e = jnp.exp(z - m)                             # exp(-inf) == 0 on padding
    lse = jnp.log(jnp.sum(e, axis=-1, keepdims=True))
    o_ref[...] = (z - m - lse).astype(o_ref.dtype)


def _pad_to(a, shape):
    return jnp.pad(a, [(0, s - d) for d, s in zip(a.shape, shape)])


def _round_up(n, m):
    return ((n + m - 1) // m) * m


@functools.partial(jax.jit, static_argnames=("image_size", "block_rows"))
def nnet_forward(x, params, *, image_size, block_rows=2048):
    """Pallas-backed NNet.forward. x: any shape flattening to (-1, image_size)."""
    w0, b0, w1, b1, w2, b2 = params
    x = x.reshape(-1, image_size).astype(jnp.float32)
    B = x.shape[0]

    # Batch tiling: no wrapper-side pad/copy of x (ragged last block is fine).
    n_blocks = pl.cdiv(B, block_rows)
    if B >= 512:                      # v7x: >= 2 (even) steps so the "parallel"
        n_blocks = max(n_blocks, 2)   # axis can split across both TensorCores.
        n_blocks += n_blocks % 2
    TB = _round_up(pl.cdiv(B, n_blocks), 16)
    if TB >= B:                       # single-block case: block == full array
        TB, n_blocks = B, 1
    else:
        n_blocks = pl.cdiv(B, TB)

    # Weights/biases are tiny: pad only feature dims to 128 lanes; zero padding
    # keeps padded activations exactly zero through ReLU. Biases fused -> (3,128).
    w0p = _pad_to(w0, (image_size, LANE)).astype(jnp.bfloat16)
    w1p = _pad_to(w1, (LANE, LANE)).astype(jnp.bfloat16)
    w2p = _pad_to(w2, (LANE, LANE)).astype(jnp.bfloat16)
    bias = jnp.stack([_pad_to(b0, (LANE,)),
                      _pad_to(b1, (LANE,)),
                      _pad_to(b2, (LANE,))]).astype(jnp.float32)

    # Explicit VMEM budget (covers v5e's 16 MiB scoped default; stays well under
    # v7x's 64 MiB physical VMEM at the default 2048-row tile).
    w_bytes = (w0p.size + w1p.size + w2p.size) * 2 + bias.size * 4
    vmem_est = (2 * TB * image_size * 4        # double-buffered f32 x stream
                + 2 * TB * LANE * 2            # double-buffered bf16 out stream
                + 4 * TB * LANE * 4            # f32 intermediates + headroom
                + w_bytes)
    vmem_limit = int(min(56 << 20, max(2 * vmem_est, 16 << 20)))

    flops = 2 * B * (image_size * LANE + LANE * LANE + LANE * LANE)
    bytes_accessed = x.size * 4 + B * LANE * 2 + w_bytes

    const = lambda i: (0, 0)
    out = pl.pallas_call(
        _nnet_kernel,
        out_shape=jax.ShapeDtypeStruct((B, LANE), jnp.bfloat16),
        grid=(n_blocks,),
        in_specs=[
            pl.BlockSpec((TB, image_size), lambda i: (i, 0)),  # x: batch-tiled
            pl.BlockSpec((image_size, LANE), const),           # w0: VMEM-resident
            pl.BlockSpec((LANE, LANE), const),                 # w1
            pl.BlockSpec((LANE, LANE), const),                 # w2
            pl.BlockSpec((3, LANE), const),                    # fused biases
        ],
        out_specs=pl.BlockSpec((TB, LANE), lambda i: (i, 0)),
        compiler_params=pltpu.CompilerParams(
            dimension_semantics=("parallel",),
            vmem_limit_bytes=vmem_limit),
        cost_estimate=pl.CostEstimate(
            flops=flops,
            transcendentals=B * (LANE + 1),
            bytes_accessed=bytes_accessed),
    )(x, w0p, w1p, w2p, bias)

    # Padded lanes hold -inf; slice to the 10 real classes right at the call.
    return out[:, :H2]


def init_params(key, image_size):
    """Deterministic synthetic init (shapes match nn.Linear layers of NNet)."""
    ks = jax.random.split(key, 6)
    scale = 0.1
    w0 = scale * jax.random.normal(ks[0], (image_size, H0), jnp.float32)
    b0 = scale * jax.random.normal(ks[1], (H0,), jnp.float32)
    w1 = scale * jax.random.normal(ks[2], (H0, H1), jnp.float32)
    b1 = scale * jax.random.normal(ks[3], (H1,), jnp.float32)
    w2 = scale * jax.random.normal(ks[4], (H1, H2), jnp.float32)
    b2 = scale * jax.random.normal(ks[5], (H2,), jnp.float32)
    return (w0, b0, w1, b1, w2, b2)


def _reference(x, params, image_size):
    """Plain-JAX f32 reference mirroring the PyTorch forward."""
    w0, b0, w1, b1, w2, b2 = params
    x = x.reshape(-1, image_size)
    h = jax.nn.relu(x @ w0 + b0)
    h = jax.nn.relu(h @ w1 + b1)
    h = jax.nn.relu(h @ w2 + b2)
    return jax.nn.log_softmax(h, axis=1)


if __name__ == "__main__":
    image_size = 64          # small stand-in for 784 (28*28)

    key = jax.random.PRNGKey(0)
    k_x1, k_x2, k_x3, k_p = jax.random.split(key, 4)
    params = init_params(k_p, image_size)

    # Case 1: tiny batch -> single full-array block.
    x1 = jax.random.normal(k_x1, (12, image_size), jnp.float32)
    y1 = jax.block_until_ready(nnet_forward(x1, params, image_size=image_size))
    y1_ref = _reference(x1, params, image_size)
    assert y1.shape == (12, H2)
    assert jnp.allclose(y1.astype(jnp.float32), y1_ref, atol=2.5e-2, rtol=2e-2), \
        "mismatch (case 1)"

    # Case 2: small block_rows -> 3 ragged batch tiles, resident-weight path.
    x2 = jax.random.normal(k_x2, (300, image_size), jnp.float32)
    y2 = jax.block_until_ready(
        nnet_forward(x2, params, image_size=image_size, block_rows=128))
    y2_ref = _reference(x2, params, image_size)
    assert y2.shape == (300, H2)
    assert jnp.allclose(y2.astype(jnp.float32), y2_ref, atol=2.5e-2, rtol=2e-2), \
        "mismatch (case 2)"

    # Case 3: B >= 512 -> forced 2 grid steps (exercises the 2-TC split path).
    x3 = jax.random.normal(k_x3, (600, image_size), jnp.float32)
    y3 = jax.block_until_ready(nnet_forward(x3, params, image_size=image_size))
    y3_ref = _reference(x3, params, image_size)
    assert y3.shape == (600, H2)
    assert jnp.allclose(y3.astype(jnp.float32), y3_ref, atol=2.5e-2, rtol=2e-2), \
        "mismatch (case 3)"

    print("KERNEL_OK")
</pallas_src>

<mosaic_0001>
module attributes {stable_mosaic.version = 11 : i64} {
  func.func @_nnet_kernel(%arg0: i32, %arg1: memref<12x64xf32, #tpu.memory_space<vmem>>, %arg2: memref<64x128xbf16, #tpu.memory_space<vmem>>, %arg3: memref<128x128xbf16, #tpu.memory_space<vmem>>, %arg4: memref<128x128xbf16, #tpu.memory_space<vmem>>, %arg5: memref<3x128xf32, #tpu.memory_space<vmem>>, %arg6: memref<12x128xbf16, #tpu.memory_space<vmem>>) attributes {dimension_semantics = [#tpu.dimension_semantics<parallel>], iteration_bounds = array<i64: 1>, scalar_prefetch = 0 : i64, scratch_operands = 0 : i64, tpu.core_type = #tpu.core_type<tc>, window_params = [{transform_indices = @transform_0, window_bounds = array<i64: 12, 64>}, {pipeline_mode = #tpu.pipeline_mode<synchronous>, transform_indices = @transform_1, window_bounds = array<i64: 64, 128>}, {pipeline_mode = #tpu.pipeline_mode<synchronous>, transform_indices = @transform_2, window_bounds = array<i64: 128, 128>}, {pipeline_mode = #tpu.pipeline_mode<synchronous>, transform_indices = @transform_3, window_bounds = array<i64: 128, 128>}, {pipeline_mode = #tpu.pipeline_mode<synchronous>, transform_indices = @transform_4, window_bounds = array<i64: 3, 128>}, {transform_indices = @transform_5, window_bounds = array<i64: 12, 128>}]} {
    %c0 = arith.constant 0 : index
    %c0_0 = arith.constant 0 : index
    %0 = vector.load %arg1[%c0, %c0_0] : memref<12x64xf32, #tpu.memory_space<vmem>>, vector<12x64xf32>
    %1 = arith.truncf %0 : vector<12x64xf32> to vector<12x64xbf16>
    %c0_1 = arith.constant 0 : index
    %c0_2 = arith.constant 0 : index
    %2 = vector.load %arg5[%c0_1, %c0_2] : memref<3x128xf32, #tpu.memory_space<vmem>>, vector<3x128xf32>
    %c0_3 = arith.constant 0 : index
    %c0_4 = arith.constant 0 : index
    %3 = vector.load %arg2[%c0_3, %c0_4] : memref<64x128xbf16, #tpu.memory_space<vmem>>, vector<64x128xbf16>
    %cst = arith.constant dense<0.000000e+00> : vector<12x128xf32>
    %4 = tpu.matmul %1, %3, %cst {dimension_numbers = #tpu.dot_dimension_numbers<[1], [0], [0], [1], [0, 0, 1, 1], [], []>} : vector<12x64xbf16>, vector<64x128xbf16>, vector<12x128xf32> -> vector<12x128xf32>
    %5 = vector.extract_strided_slice %2 {offsets = [0, 0], sizes = [1, 128], strides = [1, 1]} : vector<3x128xf32> to vector<1x128xf32>
    %6 = vector.broadcast %5 : vector<1x128xf32> to vector<12x128xf32>
    %7 = arith.addf %4, %6 : vector<12x128xf32>
    %cst_5 = arith.constant 0.000000e+00 : f32
    %8 = vector.broadcast %cst_5 : f32 to vector<12x128xf32>
    %9 = arith.maximumf %7, %8 : vector<12x128xf32>
    %10 = arith.truncf %9 : vector<12x128xf32> to vector<12x128xbf16>
    %c0_6 = arith.constant 0 : index
    %c0_7 = arith.constant 0 : index
    %11 = vector.load %arg3[%c0_6, %c0_7] : memref<128x128xbf16, #tpu.memory_space<vmem>>, vector<128x128xbf16>
    %cst_8 = arith.constant dense<0.000000e+00> : vector<12x128xf32>
    %12 = tpu.matmul %10, %11, %cst_8 {dimension_numbers = #tpu.dot_dimension_numbers<[1], [0], [0], [1], [0, 0, 1, 1], [], []>} : vector<12x128xbf16>, vector<128x128xbf16>, vector<12x128xf32> -> vector<12x128xf32>
    %13 = vector.extract_strided_slice %2 {offsets = [1, 0], sizes = [1, 128], strides = [1, 1]} : vector<3x128xf32> to vector<1x128xf32>
    %14 = vector.broadcast %13 : vector<1x128xf32> to vector<12x128xf32>
    %15 = arith.addf %12, %14 : vector<12x128xf32>
    %cst_9 = arith.constant 0.000000e+00 : f32
    %16 = vector.broadcast %cst_9 : f32 to vector<12x128xf32>
    %17 = arith.maximumf %15, %16 : vector<12x128xf32>
    %18 = arith.truncf %17 : vector<12x128xf32> to vector<12x128xbf16>
    %c0_10 = arith.constant 0 : index
    %c0_11 = arith.constant 0 : index
    %19 = vector.load %arg4[%c0_10, %c0_11] : memref<128x128xbf16, #tpu.memory_space<vmem>>, vector<128x128xbf16>
    %cst_12 = arith.constant dense<0.000000e+00> : vector<12x128xf32>
    %20 = tpu.matmul %18, %19, %cst_12 {dimension_numbers = #tpu.dot_dimension_numbers<[1], [0], [0], [1], [0, 0, 1, 1], [], []>} : vector<12x128xbf16>, vector<128x128xbf16>, vector<12x128xf32> -> vector<12x128xf32>
    %21 = vector.extract_strided_slice %2 {offsets = [2, 0], sizes = [1, 128], strides = [1, 1]} : vector<3x128xf32> to vector<1x128xf32>
    %22 = vector.broadcast %21 : vector<1x128xf32> to vector<12x128xf32>
    %23 = arith.addf %20, %22 : vector<12x128xf32>
    %cst_13 = arith.constant 0.000000e+00 : f32
    %24 = vector.broadcast %cst_13 : f32 to vector<12x128xf32>
    %25 = arith.maximumf %23, %24 : vector<12x128xf32>
    %26 = tpu.iota {dimensions = array<i32: 1>} : vector<12x128xi32>
    %c10_i32 = arith.constant 10 : i32
    %27 = vector.broadcast %c10_i32 : i32 to vector<12x128xi32>
    %28 = arith.cmpi slt, %26, %27 : vector<12x128xi32>
    %cst_14 = arith.constant 0xFF800000 : f32
    %29 = vector.broadcast %cst_14 : f32 to vector<12x128xf32>
    %30 = arith.select %28, %25, %29 : vector<12x128xi1>, vector<12x128xf32>
    %cst_15 = arith.constant dense<0xFF800000> : vector<12xf32>
    %31 = vector.multi_reduction <maximumf>, %30, %cst_15 [1] : vector<12x128xf32> to vector<12xf32>
    %32 = vector.shape_cast %31 : vector<12xf32> to vector<12x1xf32>
    %33 = vector.broadcast %32 : vector<12x1xf32> to vector<12x128xf32>
    %34 = arith.subf %30, %33 : vector<12x128xf32>
    %35 = math.exp %34 : vector<12x128xf32>
    %cst_16 = arith.constant dense<0.000000e+00> : vector<12xf32>
    %36 = vector.multi_reduction <add>, %35, %cst_16 [1] : vector<12x128xf32> to vector<12xf32>
    %37 = vector.shape_cast %36 : vector<12xf32> to vector<12x1xf32>
    %38 = math.log %37 : vector<12x1xf32>
    %39 = vector.broadcast %32 : vector<12x1xf32> to vector<12x128xf32>
    %40 = arith.subf %30, %39 : vector<12x128xf32>
    %41 = vector.broadcast %38 : vector<12x1xf32> to vector<12x128xf32>
    %42 = arith.subf %40, %41 : vector<12x128xf32>
    %43 = arith.truncf %42 : vector<12x128xf32> to vector<12x128xbf16>
    %c0_17 = arith.constant 0 : index
    %c0_18 = arith.constant 0 : index
    %44 = vector.load %arg6[%c0_17, %c0_18] : memref<12x128xbf16, #tpu.memory_space<vmem>>, vector<12x128xbf16>
    tpu.vector_store %arg6[%c0_17, %c0_18], %43 {strides = array<i32>} : memref<12x128xbf16, #tpu.memory_space<vmem>>, vector<12x128xbf16>,
    return
  }
  func.func @transform_0(%arg0: i32) -> (i32, i32) {
    %c0_i32 = arith.constant 0 : i32
    %c0_i32_0 = arith.constant 0 : i32
    return %arg0, %c0_i32 : i32, i32
  }
  func.func @transform_1(%arg0: i32) -> (i32, i32) {
    %c0_i32 = arith.constant 0 : i32
    %c0_i32_0 = arith.constant 0 : i32
    %c0_i32_1 = arith.constant 0 : i32
    return %c0_i32, %c0_i32_0 : i32, i32
  }
  func.func @transform_2(%arg0: i32) -> (i32, i32) {
    %c0_i32 = arith.constant 0 : i32
    %c0_i32_0 = arith.constant 0 : i32
    %c0_i32_1 = arith.constant 0 : i32
    return %c0_i32, %c0_i32_0 : i32, i32
  }
  func.func @transform_3(%arg0: i32) -> (i32, i32) {
    %c0_i32 = arith.constant 0 : i32
    %c0_i32_0 = arith.constant 0 : i32
    %c0_i32_1 = arith.constant 0 : i32
    return %c0_i32, %c0_i32_0 : i32, i32
  }
  func.func @transform_4(%arg0: i32) -> (i32, i32) {
    %c0_i32 = arith.constant 0 : i32
    %c0_i32_0 = arith.constant 0 : i32
    %c0_i32_1 = arith.constant 0 : i32
    return %c0_i32, %c0_i32_0 : i32, i32
  }
  func.func @transform_5(%arg0: i32) -> (i32, i32) {
    %c0_i32 = arith.constant 0 : i32
    %c0_i32_0 = arith.constant 0 : i32
    return %arg0, %c0_i32 : i32, i32
  }
}

</mosaic_0001>

<bundles_post_ra>
// kernel: nnet_forward.1
= control target key start
LH: loop header
LB: loop body
LE: loop exit
PB: predicated region body
PF: predicated region fallthrough
CT: control target
= control target key end

     0   :  { %v544_v1 = vmov 0.0   ;;  %vm545_vm0 = vmmov 0   ;;  %vm62_vm1 = vcmask 523264   ;;  %s688_s0 = inlined_call_operand.vmem [shape: f32[12,64], index: 0, kind: input, shape index: {}]   ;;  %s689_s1 = inlined_call_operand.vmem [shape: bf16[64,128], index: 1, kind: input, shape index: {}]   ;;  %s690_s2 = inlined_call_operand.vmem [shape: bf16[128,128], index: 2, kind: input, shape index: {}]   ;;  %s691_s3 = inlined_call_operand.vmem [shape: bf16[128,128], index: 3, kind: input, shape index: {}]   ;;  %s692_s4 = inlined_call_operand.vmem [shape: f32[3,128], index: 4, kind: input, shape index: {}]   ;;  %s693_s5 = inlined_call_operand.hbm [shape: bf16[12,128], index: 5, kind: output, shape index: {}]  }
   0x1   :  { %v492_v0 = vld [vmem:[%s689_s1] sm:$0xff]   ;;  %435 = vmatprep.subr.bf16.mxu0 %v544_v1  ;;  %447 = vmatprep.subr.bf16.mxu1 %v544_v1  ;;  %v493_v2 = vld [vmem:[%s689_s1 + $0x8] sm:$0xff]   ;;  %v494_v4 = vld [vmem:[%s689_s1 + $0x10] sm:$0xff]  }
   0x2   :  { %436 = vmatpush3.bf16.msra.mxu0 %v492_v0  ;;  %443 = vmatprep.mubr.msk.bf16.mxu0 %vm545_vm0, %v544_v1  ;;  %v496_v3 = vld [vmem:[%s690_s2] sm:$0xff]   ;;  %v497_v5 = vld [vmem:[%s690_s2 + $0x8] sm:$0xff]   ;;  %v495_v6 = vld [vmem:[%s689_s1 + $0x18] sm:$0xff]  }
   0x3   :  { %437 = vmatprep.subr.bf16.mxu0 %v544_v1  ;;  %463 = vmatprep.mubr.msk.bf16.mxu1 %vm545_vm0, %v544_v1  ;;  %v22_v7 = vld [vmem:[%s688_s0] sm:$0xff]  ;;  %v23_v8 = vld [vmem:[%s688_s0 + $0x8] sm:$0xf]  ;;  %v498_v9 = vld [vmem:[%s690_s2 + $0x10] sm:$0xff]  }
   0x4   :  { %448 = vmatpush3.bf16.msra.mxu1 %v496_v3  ;;  %v24_v10 = vpack.c.bf16 %v23_v8, %v22_v7  ;;  %v499_v11 = vld [vmem:[%s690_s2 + $0x18] sm:$0xff]  }
   0x5   :  { %449 = vmatprep.subr.bf16.mxu1 %v544_v1 }
   0x6   :  { %438 = vmatpush3.bf16.msra.mxu0 %v493_v2 }
   0x7   :  { %439 = vmatprep.subr.bf16.mxu0 %v544_v1 }
   0x8   :  { %450 = vmatpush3.bf16.msra.mxu1 %v497_v5 }
   0x9   :  { %451 = vmatprep.subr.bf16.mxu1 %v544_v1 }
   0xa   :  { %440 = vmatpush3.bf16.msra.mxu0 %v494_v4 }
   0xb   :  { %441 = vmatprep.subr.bf16.mxu0 %v544_v1 }
   0xc   :  { %452 = vmatpush3.bf16.msra.mxu1 %v498_v9 }
   0xd   :  { %453 = vmatprep.subr.bf16.mxu1 %v544_v1 }
   0xe   :  { %442 = vmatpush3.bf16.msra.mxu0 %v495_v6 }
   0xf   :  { %467 = vmatprep.subr.bf16.mxu0 %v544_v1 }
  0x11   :  { %444 = vmatmul.mubr.msk.bf16.vlgmr.msra.gmra.mrb[0].mxu0 %vm62_vm1, %v24_v10 }
  0x12   :  { %10 = vsyncpa [#allocation3], 0  ;;  %483 = vmatprep.mubr.msk.bf16.mxu0 %vm545_vm0, %v544_v1  ;;  %454 = vmatpush3.bf16.msra.mxu1 %v499_v11  ;;  %v500_v12 = vld [vmem:[%s690_s2 + $0x20] sm:$0xff]   ;;  %v501_v13 = vld [vmem:[%s690_s2 + $0x28] sm:$0xff]   ;;  %v34_v22 = vlaneseq  ;;  %vm340_vm2 = vcmask 1043456  }
  0x13   :  { %455 = vmatprep.subr.bf16.mxu1 %v544_v1  ;;  %v502_v14 = vld [vmem:[%s690_s2 + $0x30] sm:$0xff]   ;;  %v503_v15 = vld [vmem:[%s690_s2 + $0x38] sm:$0xff]   ;;  %v504_v16 = vld [vmem:[%s691_s3] sm:$0xff]  }
  0x14   :  { %468 = vmatpush3.bf16.msra.mxu0 %v504_v16  ;;  %v505_v17 = vld [vmem:[%s691_s3 + $0x8] sm:$0xff]   ;;  %v506_v18 = vld [vmem:[%s691_s3 + $0x10] sm:$0xff]   ;;  %v507_v19 = vld [vmem:[%s691_s3 + $0x18] sm:$0xff]   ;;  %v35_v23 = vshrl.u32 %v34_v22, 7  ;;  %v334_v54 = vand.u32 127, %v34_v22 }
  0x15   :  { %469 = vmatprep.subr.bf16.mxu0 %v544_v1  ;;  %v508_v20 = vld [vmem:[%s691_s3 + $0x20] sm:$0xff]   ;;  %v509_v21 = vld [vmem:[%s691_s3 + $0x28] sm:$0xff]   ;;  %v510_v36 = vld [vmem:[%s691_s3 + $0x30] sm:$0xff]  }
  0x16   :  { %456 = vmatpush3.bf16.msra.mxu1 %v500_v12  ;;  %v36_v24 = vsub.s32 0, %v35_v23  ;;  %v25_v25 = vld [vmem:[%s692_s4] sm:$0x7]  ;;  %v511_v37 = vld [vmem:[%s691_s3 + $0x38] sm:$0xff]   ;;  %v128_v38 = vsub.s32 1, %v35_v23  ;;  %v240_v49 = vsub.s32 2, %v35_v23 }
  0x17   :  { %457 = vmatprep.subr.bf16.mxu1 %v544_v1  ;;  %vm335_vm3 = vcmp.lt.s32.totalorder %v334_v54, 10  ;;  %s546_s3 = smov [#allocation2]  }
  0x18   :  { %470 = vmatpush3.bf16.msra.mxu0 %v505_v17  ;;  %v37_v26 = vrot.slane %v25_v25, %v36_v24  ;;  %v129_v39 = vrot.slane %v25_v25, %v128_v38  ;;  %v241_v50 = vrot.slane %v25_v25, %v240_v49  ;;  %s376_s10 = sshll.u32 %s546_s3, 4  ;;  %s377_s10 = int_to_ptr.vmem [resolvable:$true] %s376_s10 }
  0x19   :  { %471 = vmatprep.subr.bf16.mxu0 %v544_v1  ;;  %s520_s1 = scalar_lea.vmem %s377_s10, 128  ;;  %p525_p1 = scmp.lt.s32.totalorder %s377_s10, %s377_s10 }
  0x1a   :  { %458 = vmatpush3.bf16.msra.mxu1 %v501_v13  ;;  %p521_p0 = scmp.ne.s32.totalorder %s377_s10, %s520_s1  ;;  %p526_p2 = scmp.lt.s32.totalorder %s520_s1, %s520_s1 }
  0x1b   :  { %459 = vmatprep.subr.bf16.mxu1 %v544_v1 }
  0x1c   :  { %472 = vmatpush3.bf16.msra.mxu0 %v506_v18  ;;  %p527_p3 = por %p526_p2, %p525_p1 }
  0x1d   :  { %473 = vmatprep.subr.bf16.mxu0 %v544_v1 }
  0x1e   :  { %460 = vmatpush3.bf16.msra.mxu1 %v502_v14  ;;  %p528_p4 = pnand %p527_p3, %p521_p0 }
  0x1f   :  { %461 = vmatprep.subr.bf16.mxu1 %v544_v1 }
  0x20   :  { %474 = vmatpush3.bf16.msra.mxu0 %v507_v19 }
  0x21   :  { %475 = vmatprep.subr.bf16.mxu0 %v544_v1 }
  0x22   :  { %462 = vmatpush3.bf16.msra.mxu1 %v503_v15 }
  0x24   :  { %476 = vmatpush3.bf16.msra.mxu0 %v508_v20 }
  0x25   :  { %477 = vmatprep.subr.bf16.mxu0 %v544_v1 }
  0x28   :  { %478 = vmatpush3.bf16.msra.mxu0 %v509_v21 }
  0x29   :  { %479 = vmatprep.subr.bf16.mxu0 %v544_v1 }
  0x2c   :  { %480 = vmatpush3.bf16.msra.mxu0 %v510_v36 }
  0x2d   :  { %481 = vmatprep.subr.bf16.mxu0 %v544_v1 }
  0x30   :  { %482 = vmatpush3.bf16.msra.mxu0 %v511_v37 }
  0xe4   :  { %v100_v27 = vpop.f32.mrb[0].mxu0 }
  0xe5   :  { %v101_v28 = vadd.f32 %v100_v27, %v37_v26  ;;  %v445_v29 = vpop.f32.mrb[1].mxu0 }
  0xe6   :  { %v103_v30 = vpop.f32.mrb[2].mxu0 }
  0xe7   :  { %v104_v31 = vadd.f32 %v103_v30, %v37_v26  ;;  %v446_v32 = vpop.f32.mrb[3].mxu0  ;;  %v107_v33 = vmax.f32 %v101_v28, 0.0 }
  0xe9   :  { %v108_v34 = vmax.f32 %v104_v31, 0.0 }
  0xeb   :  { %v109_v35 = vpack.c.bf16 %v108_v34, %v107_v33 }
  0xed   :  { %464 = vmatmul.mubr.bf16.vlgmr.msra.gmra.mrb[0].mxu1 %v109_v35 }
 0x1c0   :  { %v212_v40 = vpop.f32.mrb[0].mxu1 }
 0x1c1   :  { %v213_v41 = vadd.f32 %v212_v40, %v129_v39  ;;  %v465_v42 = vpop.f32.mrb[1].mxu1 }
 0x1c2   :  { %v215_v43 = vpop.f32.mrb[2].mxu1 }
 0x1c3   :  { %v216_v44 = vadd.f32 %v215_v43, %v129_v39  ;;  %v466_v45 = vpop.f32.mrb[3].mxu1  ;;  %v219_v46 = vmax.f32 %v213_v41, 0.0 }
 0x1c5   :  { %v220_v47 = vmax.f32 %v216_v44, 0.0 }
 0x1c7   :  { %v221_v48 = vpack.c.bf16 %v220_v47, %v219_v46 }
 0x1c9   :  { %484 = vmatmul.mubr.bf16.vlgmr.msra.gmra.mrb[4].mxu0 %v221_v48 }
 0x29c   :  { %v324_v51 = vpop.f32.mrb[4].mxu0 }
 0x29d   :  { %v485_v52 = vpop.f32.mrb[5].mxu0  ;;  %v325_v57 = vadd.f32 %v324_v51, %v241_v50 }
 0x29e   :  { %v327_v53 = vpop.f32.mrb[6].mxu0 }
 0x29f   :  { %v328_v55 = vadd.f32 %v327_v53, %v241_v50  ;;  %v486_v56 = vpop.f32.mrb[7].mxu0  ;;  %v331_v60 = vmax.f32 %v325_v57, 0.0 }
 0x2a1   :  { %v332_v58 = vmax.f32 %v328_v55, 0.0  ;;  %v336_v62 = vsel %vm335_vm3, %v331_v60, -inf }
 0x2a3   :  { %v337_v59 = vsel %vm335_vm3, %v332_v58, -inf }
 0x2a4   :  { %v341_v61 = vsel %vm340_vm2, %v337_v59, -inf }
 0x2a5   :  { %342 = vmax.xlane.f32.xlu0 %v341_v61 }
 0x2a9   :  { %338 = vmax.xlane.f32.xlu0 %v336_v62 }
 0x332   :  { %v343_v63 = vpop.xlane.xlu0 %342 }
 0x333   :  { %v345_v0 = vsub.f32 %v337_v59, %v343_v63 }
 0x335   :  { %v348_v3 = vmul.f32 1.442695, %v345_v0 }
 0x336   :  { %v339_v1 = vpop.xlane.xlu0 %338 }
 0x337   :  { %v344_v2 = vsub.f32 %v336_v62, %v339_v1 }
 0x339   :  { %v346_v4 = vmul.f32 1.442695, %v344_v2 }
 0x33b   :  { %512 = vpow2.f32 %v346_v4 }
 0x33c   :  { %514 = vpow2.f32 %v348_v3 }
 0x345   :  { %v513_v5 = vpop.eup %512 }
 0x346   :  { %v515_v6 = vpop.eup %514  ;;  %350 = vadd.xlane.f32.xlu1 %v513_v5 }
 0x347   :  { %v352_v7 = vsel %vm340_vm2, %v515_v6, 0.0 }
 0x34a   :  { %353 = vadd.xlane.f32.xlu1 %v352_v7 }
 0x3d3   :  { %v351_v8 = vpop.xlane.xlu1 %350 }
 0x3d4   :  { %516 = vlog2.f32 %v351_v8 }
 0x3d7   :  { %v354_v9 = vpop.xlane.xlu1 %353 }
 0x3d8   :  { %518 = vlog2.f32 %v354_v9 }
 0x3de   :  { %v517_v10 = vpop.eup %516 }
 0x3df   :  { %v356_v11 = vmul.f32 0.6931472, %v517_v10 }
 0x3e1   :  { %v359_v12 = vsub.f32 %v344_v2, %v356_v11 }
 0x3e2   :  { %v519_v13 = vpop.eup %518 }
 0x3e3   :  { %v410_v14 = vpack.c.bf16 %v359_v12, %v359_v12  ;;  %v358_v15 = vmul.f32 0.6931472, %v519_v13 }
 0x3e5   :  { %369 = vst [vmem:[#allocation2] sm:$0xf] %v410_v14  ;;  %v360_v16 = vsub.f32 %v345_v0, %v358_v15 }
 0x3e7   :  { %v411_v17 = vpack.c.bf16 %v360_v16, %v360_v16 }
 0x3e9   :  { %370 = vst [vmem:[#allocation2 + $0x4] sm:$0x3] %v411_v17 }
 0x3ea   :  { %531 = shalt.err (!%p528_p4)
}
 0x3eb   :  { %s532_s12 = scalar_lea.hbm %s693_s5, 128 }
 0x3ec   :  { %p533_p5 = scmp.ne.s32.totalorder %s693_s5, %s532_s12  ;;  %p536_p6 = scmp.lt.u32.totalorder %s532_s12, %s693_s5 }
 0x3ee   :  { %p538_p7 = pnand %p536_p6, %p533_p5 }
 0x3f0   :  { %541 = shalt.err (!%p538_p7)
}
 0x3f1   :  { %s547_s17 = smov 64   ;;  %s548_s18 = smov 4  }
 0x3f2   :  { %382 = dma.vmem_to_hbm [thread:$0]  %s377_s10, 128, %s693_s5, [#allocation3], %s547_s17, %s547_s17, %s548_s18  }
 0x3f3   :  { %542 = dma.done.wait [#allocation3], 128  }
 0x3f4   :  { %543 = vsyncadd [#allocation3], 4294967168 }
 0x3f5   :  { %386 = vsyncpa [#allocation3], 1 }

</bundles_post_ra>
